<compile_context>
chip_gen: v5e
topology: v5e:2x2
jax: 0.10.0
libtpu: 0.0.40
codegen_flags: <defaults>
</compile_context>

<pallas_src>
from functools import partial

import jax
import jax.numpy as jnp
from jax import lax
from jax.experimental import pallas as pl
from jax.experimental.pallas import tpu as pltpu


def ensemble_kernel(x_ref, w_ref, bmean_ref, o_ref, wsum_ref, *,
                    inv_m, mb, n_models, ragged):
    g = pl.program_id(1)  # model-chunk step (reduction axis, innermost)

    @pl.when(g == 0)
    def _():
        wsum_ref[...] = jnp.zeros_like(wsum_ref)

    # Accumulate this chunk's weight sum one (D_in, tile_dout) slab at a time:
    # pure VPU adds hidden under the streaming W DMA, flat vreg pressure.
    def add_slab(i, carry):
        wsum_ref[...] += w_ref[i].astype(jnp.float32)
        return carry

    if ragged:
        # Last chunk may hold fewer than `mb` valid models; never touch the
        # clipped / unspecified tail of the block.
        n_valid = jnp.minimum(mb, n_models - g * mb)
        lax.fori_loop(0, n_valid, add_slab, 0)
    else:
        lax.fori_loop(0, mb, add_slab, 0, unroll=(mb <= 8))

    @pl.when(g == pl.num_programs(1) - 1)
    def _():
        # Single MXU matmul against the summed weights; scale by 1/M on the
        # small output tile and add the precomputed mean bias once.
        y = jnp.dot(
            x_ref[...].astype(jnp.float32),
            wsum_ref[...],
            preferred_element_type=jnp.float32,
        )
        o_ref[...] = (y * inv_m + bmean_ref[...]).astype(o_ref.dtype)


def model_ensemble_forward(x, weights, biases):
    """x: (B, D_in); weights: (M, D_in, D_out); biases: (M, D_out)."""
    M, D_in, D_out = weights.shape
    B = x.shape[0]
    w_itemsize = jnp.dtype(weights.dtype).itemsize
    x_itemsize = jnp.dtype(x.dtype).itemsize

    # ---- Generation-aware VMEM budgeting --------------------------------
    try:
        info = pltpu.get_tpu_info()
        vmem_cap = int(getattr(info, "vmem_capacity_bytes", 64 << 20))
    except Exception:
        vmem_cap = 64 << 20                      # conservative (v7x-like) fallback
    big_vmem = vmem_cap >= (96 << 20)            # v5e / v6e: 128 MiB ; v7x: 64 MiB/TC
    vmem_limit = (64 << 20) if big_vmem else (48 << 20)
    per_buf_cap = (20 << 20) if big_vmem else (10 << 20)

    # ---- Output-column tiling (megacore sharding; lane-aligned tiles) ---
    if D_out % 256 == 0:
        n_j, tile_dout = 2, D_out // 2           # each tile a multiple of 128 lanes
    else:
        n_j, tile_dout = 1, D_out                # full-dim block: exempt from 128 rule

    # ---- Model-chunk size: biggest double-buffered W chunk that fits ----
    per_model_bytes = D_in * tile_dout * w_itemsize
    resident = (2 * B * D_in * x_itemsize        # x (double-buffered by pipeline)
                + 2 * B * tile_dout * x_itemsize  # output tile
                + 2 * tile_dout * 4               # mean bias
                + D_in * tile_dout * 4)           # f32 weight-sum scratch
    w_budget = max(per_model_bytes, (vmem_limit - resident - (4 << 20)) // 2)
    per_buf = min(per_buf_cap, w_budget)
    mb = max(1, min(M, per_buf // max(1, per_model_bytes)))
    n_steps = pl.cdiv(M, mb)
    ragged = (M % mb) != 0

    # Mean bias precomputed in the wrapper (tiny: O(M*D_out)).
    b_mean = jnp.mean(biases.astype(jnp.float32), axis=0).reshape(1, D_out)

    kernel = partial(ensemble_kernel, inv_m=1.0 / M, mb=int(mb),
                     n_models=M, ragged=ragged)

    cost = pl.CostEstimate(
        flops=2 * B * D_in * D_out + M * D_in * D_out,
        transcendentals=0,
        bytes_accessed=(M * D_in * D_out * w_itemsize
                        + B * D_in * x_itemsize
                        + B * D_out * x_itemsize
                        + D_out * 4),
    )

    return pl.pallas_call(
        kernel,
        out_shape=jax.ShapeDtypeStruct((B, D_out), x.dtype),
        grid_spec=pltpu.PrefetchScalarGridSpec(
            num_scalar_prefetch=0,
            grid=(n_j, n_steps),
            in_specs=[
                pl.BlockSpec((B, D_in), lambda j, g: (0, 0)),                 # x (resident)
                pl.BlockSpec((mb, D_in, tile_dout), lambda j, g: (g, 0, j)),  # W chunk
                pl.BlockSpec((1, tile_dout), lambda j, g: (0, j)),            # mean bias
            ],
            out_specs=pl.BlockSpec((B, tile_dout), lambda j, g: (0, j)),      # resident out
            scratch_shapes=[pltpu.VMEM((D_in, tile_dout), jnp.float32)],      # weight-sum acc
        ),
        compiler_params=pltpu.CompilerParams(
            dimension_semantics=("parallel", "arbitrary"),
            vmem_limit_bytes=vmem_limit,
        ),
        cost_estimate=cost,
    )(x, weights, b_mean)


if __name__ == "__main__":
    # Small, module-consistent shapes: ensemble of M=3 linear models.
    B, D_in, D_out, M = 8, 32, 16, 3

    key = jax.random.PRNGKey(0)
    kx, kw, kb = jax.random.split(key, 3)

    x = jax.random.normal(kx, (B, D_in), dtype=jnp.float32)
    # Deterministic per-model linear params (synthetic, not a checkpoint).
    weights = jax.random.normal(kw, (M, D_in, D_out), dtype=jnp.float32) * 0.1
    biases = jax.random.normal(kb, (M, D_out), dtype=jnp.float32) * 0.1

    out = model_ensemble_forward(x, weights, biases)
    out = jax.block_until_ready(out)

    # Pure-JAX reference: stack + mean over the model axis (== torch.stack(...).mean(0)).
    ref = jnp.mean(
        jnp.einsum("bi,mio->mbo", x, weights) + biases[:, None, :], axis=0
    )
    assert out.shape == (B, D_out)
    assert jnp.allclose(out, ref, atol=1e-5, rtol=1e-5), "mismatch vs reference"

    print("KERNEL_OK")
</pallas_src>

<mosaic_0001>
module attributes {stable_mosaic.version = 11 : i64} {
  func.func @ensemble_kernel(%arg0: i32, %arg1: i32, %arg2: memref<8x32xf32, #tpu.memory_space<vmem>>, %arg3: memref<3x32x16xf32, #tpu.memory_space<vmem>>, %arg4: memref<1x16xf32, #tpu.memory_space<vmem>>, %arg5: memref<8x16xf32, #tpu.memory_space<vmem>>, %arg6: memref<32x16xf32, #tpu.memory_space<vmem>>) attributes {dimension_semantics = [#tpu.dimension_semantics<parallel>, #tpu.dimension_semantics<arbitrary>], iteration_bounds = array<i64: 1, 1>, scalar_prefetch = 0 : i64, scratch_operands = 1 : i64, tpu.core_type = #tpu.core_type<tc>, window_params = [{pipeline_mode = #tpu.pipeline_mode<synchronous>, transform_indices = @transform_0, window_bounds = array<i64: 8, 32>}, {transform_indices = @transform_1, window_bounds = array<i64: 3, 32, 16>}, {transform_indices = @transform_2, window_bounds = array<i64: 1, 16>}, {transform_indices = @transform_3, window_bounds = array<i64: 8, 16>}]} {
    %c0_i32 = arith.constant 0 : i32
    %0 = arith.cmpi eq, %arg1, %c0_i32 : i32
    %1 = arith.extui %0 : i1 to i32
    %c0_i32_0 = arith.constant 0 : i32
    %2 = arith.cmpi ne, %1, %c0_i32_0 : i32
    scf.if %2 {
      %cst = arith.constant 0.000000e+00 : f32
      %24 = vector.broadcast %cst : f32 to vector<32x16xf32>
      %c0_21 = arith.constant 0 : index
      %c0_22 = arith.constant 0 : index
      %25 = vector.load %arg6[%c0_21, %c0_22] : memref<32x16xf32, #tpu.memory_space<vmem>>, vector<32x16xf32>
      tpu.vector_store %arg6[%c0_21, %c0_22], %24 {strides = array<i32>} : memref<32x16xf32, #tpu.memory_space<vmem>>, vector<32x16xf32>,
    } else {
    }
    %c0_i32_1 = arith.constant 0 : i32
    %c0 = arith.constant 0 : index
    %c0_2 = arith.constant 0 : index
    %3 = vector.load %arg6[%c0, %c0_2] : memref<32x16xf32, #tpu.memory_space<vmem>>, vector<32x16xf32>
    %4 = arith.index_cast %c0_i32_1 : i32 to index
    %c0_3 = arith.constant 0 : index
    %c0_4 = arith.constant 0 : index
    %5 = vector.load %arg3[%4, %c0_3, %c0_4] : memref<3x32x16xf32, #tpu.memory_space<vmem>>, vector<1x32x16xf32>
    %6 = vector.shape_cast %5 : vector<1x32x16xf32> to vector<32x16xf32>
    %7 = arith.addf %3, %6 : vector<32x16xf32>
    %c0_5 = arith.constant 0 : index
    %c0_6 = arith.constant 0 : index
    %8 = vector.load %arg6[%c0_5, %c0_6] : memref<32x16xf32, #tpu.memory_space<vmem>>, vector<32x16xf32>
    tpu.vector_store %arg6[%c0_5, %c0_6], %7 {strides = array<i32>} : memref<32x16xf32, #tpu.memory_space<vmem>>, vector<32x16xf32>,
    %c1_i32 = arith.constant 1 : i32
    %c0_7 = arith.constant 0 : index
    %c0_8 = arith.constant 0 : index
    %9 = vector.load %arg6[%c0_7, %c0_8] : memref<32x16xf32, #tpu.memory_space<vmem>>, vector<32x16xf32>
    %10 = arith.index_cast %c1_i32 : i32 to index
    %c0_9 = arith.constant 0 : index
    %c0_10 = arith.constant 0 : index
    %11 = vector.load %arg3[%10, %c0_9, %c0_10] : memref<3x32x16xf32, #tpu.memory_space<vmem>>, vector<1x32x16xf32>
    %12 = vector.shape_cast %11 : vector<1x32x16xf32> to vector<32x16xf32>
    %13 = arith.addf %9, %12 : vector<32x16xf32>
    %c0_11 = arith.constant 0 : index
    %c0_12 = arith.constant 0 : index
    %14 = vector.load %arg6[%c0_11, %c0_12] : memref<32x16xf32, #tpu.memory_space<vmem>>, vector<32x16xf32>
    tpu.vector_store %arg6[%c0_11, %c0_12], %13 {strides = array<i32>} : memref<32x16xf32, #tpu.memory_space<vmem>>, vector<32x16xf32>,
    %c2_i32 = arith.constant 2 : i32
    %c0_13 = arith.constant 0 : index
    %c0_14 = arith.constant 0 : index
    %15 = vector.load %arg6[%c0_13, %c0_14] : memref<32x16xf32, #tpu.memory_space<vmem>>, vector<32x16xf32>
    %16 = arith.index_cast %c2_i32 : i32 to index
    %c0_15 = arith.constant 0 : index
    %c0_16 = arith.constant 0 : index
    %17 = vector.load %arg3[%16, %c0_15, %c0_16] : memref<3x32x16xf32, #tpu.memory_space<vmem>>, vector<1x32x16xf32>
    %18 = vector.shape_cast %17 : vector<1x32x16xf32> to vector<32x16xf32>
    %19 = arith.addf %15, %18 : vector<32x16xf32>
    %c0_17 = arith.constant 0 : index
    %c0_18 = arith.constant 0 : index
    %20 = vector.load %arg6[%c0_17, %c0_18] : memref<32x16xf32, #tpu.memory_space<vmem>>, vector<32x16xf32>
    tpu.vector_store %arg6[%c0_17, %c0_18], %19 {strides = array<i32>} : memref<32x16xf32, #tpu.memory_space<vmem>>, vector<32x16xf32>,
    %c3_i32 = arith.constant 3 : i32
    %c0_i32_19 = arith.constant 0 : i32
    %21 = arith.cmpi eq, %arg1, %c0_i32_19 : i32
    %22 = arith.extui %21 : i1 to i32
    %c0_i32_20 = arith.constant 0 : i32
    %23 = arith.cmpi ne, %22, %c0_i32_20 : i32
    scf.if %23 {
      %c0_21 = arith.constant 0 : index
      %c0_22 = arith.constant 0 : index
      %24 = vector.load %arg2[%c0_21, %c0_22] : memref<8x32xf32, #tpu.memory_space<vmem>>, vector<8x32xf32>
      %c0_23 = arith.constant 0 : index
      %c0_24 = arith.constant 0 : index
      %25 = vector.load %arg6[%c0_23, %c0_24] : memref<32x16xf32, #tpu.memory_space<vmem>>, vector<32x16xf32>
      %cst = arith.constant dense<0.000000e+00> : vector<8x16xf32>
      %26 = tpu.matmul %24, %25, %cst {dimension_numbers = #tpu.dot_dimension_numbers<[1], [0], [0], [1], [0, 0, 1, 1], [], []>} : vector<8x32xf32>, vector<32x16xf32>, vector<8x16xf32> -> vector<8x16xf32>
      %cst_25 = arith.constant 0.333333343 : f32
      %27 = vector.broadcast %cst_25 : f32 to vector<8x16xf32>
      %28 = arith.mulf %26, %27 : vector<8x16xf32>
      %c0_26 = arith.constant 0 : index
      %c0_27 = arith.constant 0 : index
      %29 = vector.load %arg4[%c0_26, %c0_27] : memref<1x16xf32, #tpu.memory_space<vmem>>, vector<1x16xf32>
      %30 = vector.broadcast %29 : vector<1x16xf32> to vector<8x16xf32>
      %31 = arith.addf %28, %30 : vector<8x16xf32>
      %c0_28 = arith.constant 0 : index
      %c0_29 = arith.constant 0 : index
      %32 = vector.load %arg5[%c0_28, %c0_29] : memref<8x16xf32, #tpu.memory_space<vmem>>, vector<8x16xf32>
      tpu.vector_store %arg5[%c0_28, %c0_29], %31 {strides = array<i32>} : memref<8x16xf32, #tpu.memory_space<vmem>>, vector<8x16xf32>,
    } else {
    }
    return
  }
  func.func @transform_0(%arg0: i32, %arg1: i32) -> (i32, i32) {
    %c0_i32 = arith.constant 0 : i32
    %c0_i32_0 = arith.constant 0 : i32
    %c0_i32_1 = arith.constant 0 : i32
    return %c0_i32, %c0_i32_0 : i32, i32
  }
  func.func @transform_1(%arg0: i32, %arg1: i32) -> (i32, i32, i32) {
    %c0_i32 = arith.constant 0 : i32
    %c0_i32_0 = arith.constant 0 : i32
    return %arg1, %c0_i32, %arg0 : i32, i32, i32
  }
  func.func @transform_2(%arg0: i32, %arg1: i32) -> (i32, i32) {
    %c0_i32 = arith.constant 0 : i32
    %c0_i32_0 = arith.constant 0 : i32
    return %c0_i32, %arg0 : i32, i32
  }
  func.func @transform_3(%arg0: i32, %arg1: i32) -> (i32, i32) {
    %c0_i32 = arith.constant 0 : i32
    %c0_i32_0 = arith.constant 0 : i32
    return %c0_i32, %arg0 : i32, i32
  }
}

</mosaic_0001>

<bundles_post_ra>
// kernel: tpu_custom_call.1
= control target key start
LH: loop header
LB: loop body
LE: loop exit
PB: predicated region body
PF: predicated region fallthrough
CT: control target
= control target key end

     0   :  { %vm19_vm0 = vcmask 130048   ;;  %v168_v0 = vmov 0.0   ;;  %s252_s0 = inlined_call_operand.vmem [shape: f32[8,32], index: 0, kind: input, shape index: {}]   ;;  %s253_s1 = inlined_call_operand.vmem [shape: f32[3,32,16], index: 1, kind: input, shape index: {}]   ;;  %s254_s2 = inlined_call_operand.vmem [shape: f32[1,16], index: 2, kind: input, shape index: {}]   ;;  %s255_s3 = inlined_call_operand.hbm [shape: f32[8,16], index: 3, kind: output, shape index: {}]  }
   0x1   :  { %23 = vst.msk [vmem:[#allocation2 + $0x18] sm:$0xff] %vm19_vm0, %v168_v0 }
   0x2   :  { %20 = vst.msk [vmem:[#allocation2] sm:$0xff] %vm19_vm0, %v168_v0 }
   0x3   :  { %21 = vst.msk [vmem:[#allocation2 + $0x8] sm:$0xff] %vm19_vm0, %v168_v0 }
   0x4   :  { %22 = vst.msk [vmem:[#allocation2 + $0x10] sm:$0xff] %vm19_vm0, %v168_v0 }
   0x5   :  { %8 = vsyncpa [#allocation4], 0  ;;  %v31_v1 = vld [vmem:[%s253_s1 + $0x18] sm:$0xff]  ;;  %v28_v2 = vld [vmem:[%s253_s1] sm:$0xff]  ;;  %vm83_vm1 = vcmask 261120   ;;  %s169_s12 = smov [#allocation3]  }
   0x6   :  { %v29_v4 = vld [vmem:[%s253_s1 + $0x8] sm:$0xff]  ;;  %v30_v6 = vld [vmem:[%s253_s1 + $0x10] sm:$0xff]  ;;  %v133_v13 = vld [vmem:[%s253_s1 + $0x38] sm:$0xff]  ;;  %s119_s13 = sshll.u32 %s169_s12, 4  ;;  %s121_s16 = sshll.u32 %s255_s3, 4  ;;  %s120_s13 = int_to_ptr.vmem [resolvable:$true] %s119_s13  ;;  %s122_s16 = int_to_ptr.hbm [resolvable:$true] %s121_s16 }
   0x7   :  { %v130_v14 = vld [vmem:[%s253_s1 + $0x20] sm:$0xff]  ;;  %v131_v16 = vld [vmem:[%s253_s1 + $0x28] sm:$0xff]  ;;  %v132_v18 = vld [vmem:[%s253_s1 + $0x30] sm:$0xff] }
   0x8   :  { %v27_v3 = vld [vmem:[#allocation2 + $0x18] sm:$0xff]  ;;  %v134_v26 = vld [vmem:[%s253_s1 + $0x40] sm:$0xff]  ;;  %v135_v28 = vld [vmem:[%s253_s1 + $0x48] sm:$0xff] }
   0x9   :  { %v35_v5 = vadd.f32 %v31_v1, %v27_v3  ;;  %v24_v7 = vld [vmem:[#allocation2] sm:$0xff]  ;;  %v137_v25 = vld [vmem:[%s253_s1 + $0x58] sm:$0xff]  ;;  %v136_v30 = vld [vmem:[%s253_s1 + $0x50] sm:$0xff] }
   0xa   :  { %v25_v8 = vld [vmem:[#allocation2 + $0x8] sm:$0xff]  ;;  %v32_v9 = vadd.f32 %v28_v2, %v24_v7  ;;  %v78_v41 = vld [vmem:[%s252_s0] sm:$0xff] }
   0xb   :  { %40 = vst.msk [vmem:[#allocation2 + $0x18] sm:$0xff] %vm19_vm0, %v35_v5  ;;  %v26_v10 = vld [vmem:[#allocation2 + $0x10] sm:$0xff]  ;;  %v33_v11 = vadd.f32 %v29_v4, %v25_v8  ;;  %v141_v42 = vld [vmem:[%s254_s2] ss:$0 sm:$0xff] }
   0xc   :  { %v34_v12 = vadd.f32 %v30_v6, %v26_v10  ;;  %37 = vst.msk [vmem:[#allocation2] sm:$0xff] %vm19_vm0, %v32_v9 }
   0xd   :  { %38 = vst.msk [vmem:[#allocation2 + $0x8] sm:$0xff] %vm19_vm0, %v33_v11 }
   0xe   :  { %39 = vst.msk [vmem:[#allocation2 + $0x10] sm:$0xff] %vm19_vm0, %v34_v12 }
  0x12   :  { %v44_v15 = vld [vmem:[#allocation2 + $0x18] sm:$0xff] }
  0x13   :  { %v53_v17 = vadd.f32 %v133_v13, %v44_v15  ;;  %v41_v19 = vld [vmem:[#allocation2] sm:$0xff] }
  0x14   :  { %v42_v20 = vld [vmem:[#allocation2 + $0x8] sm:$0xff]  ;;  %v50_v21 = vadd.f32 %v130_v14, %v41_v19 }
  0x15   :  { %57 = vst.msk [vmem:[#allocation2 + $0x18] sm:$0xff] %vm19_vm0, %v53_v17  ;;  %v43_v22 = vld [vmem:[#allocation2 + $0x10] sm:$0xff]  ;;  %v51_v23 = vadd.f32 %v131_v16, %v42_v20 }
  0x16   :  { %v52_v24 = vadd.f32 %v132_v18, %v43_v22  ;;  %54 = vst.msk [vmem:[#allocation2] sm:$0xff] %vm19_vm0, %v50_v21 }
  0x17   :  { %55 = vst.msk [vmem:[#allocation2 + $0x8] sm:$0xff] %vm19_vm0, %v51_v23 }
  0x18   :  { %56 = vst.msk [vmem:[#allocation2 + $0x10] sm:$0xff] %vm19_vm0, %v52_v24 }
  0x1c   :  { %v61_v27 = vld [vmem:[#allocation2 + $0x18] sm:$0xff] }
  0x1d   :  { %v70_v29 = vadd.f32 %v137_v25, %v61_v27  ;;  %v58_v31 = vld [vmem:[#allocation2] sm:$0xff] }
  0x1e   :  { %v59_v32 = vld [vmem:[#allocation2 + $0x8] sm:$0xff]  ;;  %v67_v33 = vadd.f32 %v134_v26, %v58_v31 }
  0x1f   :  { %74 = vst.msk [vmem:[#allocation2 + $0x18] sm:$0xff] %vm19_vm0, %v70_v29  ;;  %v60_v34 = vld [vmem:[#allocation2 + $0x10] sm:$0xff]  ;;  %v68_v35 = vadd.f32 %v135_v28, %v59_v32 }
  0x20   :  { %v69_v36 = vadd.f32 %v136_v30, %v60_v34  ;;  %71 = vst.msk [vmem:[#allocation2] sm:$0xff] %vm19_vm0, %v67_v33 }
  0x21   :  { %72 = vst.msk [vmem:[#allocation2 + $0x8] sm:$0xff] %vm19_vm0, %v68_v35 }
  0x22   :  { %73 = vst.msk [vmem:[#allocation2 + $0x10] sm:$0xff] %vm19_vm0, %v69_v36 }
  0x26   :  { %v82_v37 = vld [vmem:[#allocation2 + $0x18] sm:$0xff] }
  0x27   :  { %99 = vmatpush.msra.mxu0 %v82_v37  ;;  %v79_v40 = vld [vmem:[#allocation2] sm:$0xff] }
  0x28   :  { %v80_v39 = vld [vmem:[#allocation2 + $0x8] sm:$0xff] }
  0x29   :  { %v81_v38 = vld [vmem:[#allocation2 + $0x10] sm:$0xff] }
  0x2a   :  { %100 = vmatpush.msra.mxu0 %v81_v38 }
  0x2c   :  { %101 = vmatpush.msra.mxu0 %v80_v39 }
  0x2e   :  { %102 = vmatpush.msra.mxu0 %v79_v40 }
  0x2f   :  { %138 = vmatmul.msk.f32.vlgmr.msra.gmra.mxu0 %vm83_vm1, %v78_v41 }
  0xac   :  { %v104_v43 = vpop.f32.mrf.mxu0 }
  0xad   :  { %v107_v44 = vmul.f32 0.33333334, %v104_v43 }
  0xaf   :  { %v112_v45 = vadd.f32 %v141_v42, %v107_v44 }
  0xb1   :  { %113 = vst.msk [vmem:[#allocation3] sm:$0xff] %vm19_vm0, %v112_v45 }
  0xb2   :  { %124 = dma.vmem_to_hbm [thread:$0]  %s120_s13, 128, %s122_s16, [#allocation4]  }
  0xb3   :  { %166 = dma.done.wait [#allocation4], 128  }
  0xb4   :  { %167 = vsyncadd [#allocation4], 4294967168 }
  0xb5   :  { %129 = vsyncpa [#allocation4], 1 }

</bundles_post_ra>
